<compile_context>
chip_gen: v7x
topology: tpu7x:2x2x1
jax: 0.10.0
libtpu: 0.0.40
codegen_flags: <defaults>
</compile_context>

<pallas_src>
import jax
import jax.numpy as jnp
from jax.experimental import pallas as pl
from jax.experimental.pallas import tpu as pltpu

EPS = 1e-5  # nn.BatchNorm1d default


# ---------------------------------------------------------------------------
# In-kernel helpers
# ---------------------------------------------------------------------------
def _conv3(h, w16):
    """Conv1d(kernel_size=3, stride=1, padding=1, bias=False) on a (C, L) slab.

    w16: (Cout, 3*C) bfloat16 with taps [k=0 | k=1 | k=2] concatenated along C.
    The +/-1 shifts are XLU lane rotations with the wrapped lane zero-masked
    (= zero padding); all three taps feed a single MXU matmul (f32 accumulate).
    """
    C, L = h.shape
    lane = jax.lax.broadcasted_iota(jnp.int32, (C, L), 1)
    zero = jnp.zeros_like(h)
    left = jnp.where(lane == 0, zero, pltpu.roll(h, 1, 1))          # h[:, l-1]
    right = jnp.where(lane == L - 1, zero, pltpu.roll(h, L - 1, 1))  # h[:, l+1]
    stack = jnp.concatenate([left, h, right], axis=0).astype(jnp.bfloat16)
    return jnp.dot(w16, stack, preferred_element_type=jnp.float32)   # (Cout, L)


# ---------------------------------------------------------------------------
# Kernels (each grid step = one batch sample, native (C, L) layout)
# ---------------------------------------------------------------------------
def stats_kernel(x_ref, st_ref):
    """Per-sample partial per-channel [sum, sum of squares] of x."""
    x = x_ref[...]                                                  # (Cin, L)
    st_ref[...] = jnp.concatenate(
        [jnp.sum(x, axis=1, keepdims=True),
         jnp.sum(x * x, axis=1, keepdims=True)], axis=1)            # (Cin, 2)


def conv1_kernel(x_ref, sc1_ref, sh1_ref, w1_ref, wsc_ref,
                 y1_ref, sc_ref, st2_ref):
    """h = relu(bn1(x)); y1 = conv1(h); shortcut = wsc @ h; partial stats of y1."""
    x = x_ref[...]                                                  # (Cin, L) f32
    h = jnp.maximum(x * sc1_ref[...] + sh1_ref[...], 0.0)           # relu(bn1(x))
    y1 = _conv3(h, w1_ref[...])                                     # (Cout, L) f32
    sc = jnp.dot(wsc_ref[...], h.astype(jnp.bfloat16),
                 preferred_element_type=jnp.float32)                # 1x1 shortcut
    y1_ref[...] = y1
    sc_ref[...] = sc
    st2_ref[...] = jnp.concatenate(
        [jnp.sum(y1, axis=1, keepdims=True),
         jnp.sum(y1 * y1, axis=1, keepdims=True)], axis=1)          # (Cout, 2)


def conv2_kernel(y1_ref, scin_ref, sc2_ref, sh2_ref, w2_ref, o_ref):
    """out = conv2(relu(bn2(y1))) + shortcut."""
    y1 = y1_ref[...]                                                # (Cout, L) f32
    h2 = jnp.maximum(y1 * sc2_ref[...] + sh2_ref[...], 0.0)
    o_ref[...] = _conv3(h2, w2_ref[...]) + scin_ref[...]


# ---------------------------------------------------------------------------
# Wrapper
# ---------------------------------------------------------------------------
def resblock_forward(x, params):
    """x: (N, C_in, L) float32 (PyTorch NCL).  Returns (N, C_out, L) float32."""
    N, Cin, L = x.shape
    g1, b1, g2, b2 = params["g1"], params["b1"], params["g2"], params["b2"]
    w1, w2, wsc = params["w1"], params["w2"], params["wsc"]
    Cout = w1.shape[0]

    # One-off weight repacking: (Cout, C, 3) -> (Cout, 3*C), taps concatenated
    # along the contraction dim so the 3 taps fuse into one MXU matmul.
    w1s = jnp.transpose(w1, (0, 2, 1)).reshape(Cout, 3 * Cin).astype(jnp.bfloat16)
    w2s = jnp.transpose(w2, (0, 2, 1)).reshape(Cout, 3 * Cout).astype(jnp.bfloat16)
    wscs = wsc[:, :, 0].astype(jnp.bfloat16)                        # (Cout, Cin)

    par = pltpu.CompilerParams(dimension_semantics=("parallel",))
    cnt = float(N * L)

    # ---- pass 1: batch stats of x (for bn1) -------------------------------
    st1 = pl.pallas_call(
        stats_kernel,
        out_shape=jax.ShapeDtypeStruct((N, Cin, 2), jnp.float32),
        grid=(N,),
        in_specs=[pl.BlockSpec((pl.Squeezed(), Cin, L), lambda i: (i, 0, 0))],
        out_specs=pl.BlockSpec((pl.Squeezed(), Cin, 2), lambda i: (i, 0, 0)),
        compiler_params=par,
        cost_estimate=pl.CostEstimate(flops=2 * N * Cin * L, transcendentals=0,
                                      bytes_accessed=4 * N * Cin * L),
    )(x)
    s1, ss1 = st1[..., 0].sum(0), st1[..., 1].sum(0)
    mu1 = s1 / cnt
    var1 = jnp.maximum(ss1 / cnt - mu1 * mu1, 0.0)                  # biased var
    inv1 = jax.lax.rsqrt(var1 + EPS)
    scale1 = (g1 * inv1).reshape(Cin, 1)
    shift1 = (b1 - mu1 * g1 * inv1).reshape(Cin, 1)

    # ---- pass 2: relu(bn1) -> conv1 + shortcut + stats of y1 ---------------
    flops1 = 2 * N * L * Cout * (3 * Cin + Cin)
    bytes1 = 4 * N * L * (Cin + 2 * Cout)
    y1, sc, st2 = pl.pallas_call(
        conv1_kernel,
        out_shape=(jax.ShapeDtypeStruct((N, Cout, L), jnp.float32),
                   jax.ShapeDtypeStruct((N, Cout, L), jnp.float32),
                   jax.ShapeDtypeStruct((N, Cout, 2), jnp.float32)),
        grid=(N,),
        in_specs=[
            pl.BlockSpec((pl.Squeezed(), Cin, L), lambda i: (i, 0, 0)),  # x
            pl.BlockSpec((Cin, 1), lambda i: (0, 0)),                    # scale1
            pl.BlockSpec((Cin, 1), lambda i: (0, 0)),                    # shift1
            pl.BlockSpec((Cout, 3 * Cin), lambda i: (0, 0)),             # w1 (bf16)
            pl.BlockSpec((Cout, Cin), lambda i: (0, 0)),                 # wsc (bf16)
        ],
        out_specs=(
            pl.BlockSpec((pl.Squeezed(), Cout, L), lambda i: (i, 0, 0)),
            pl.BlockSpec((pl.Squeezed(), Cout, L), lambda i: (i, 0, 0)),
            pl.BlockSpec((pl.Squeezed(), Cout, 2), lambda i: (i, 0, 0)),
        ),
        compiler_params=par,
        cost_estimate=pl.CostEstimate(flops=flops1, transcendentals=0,
                                      bytes_accessed=bytes1),
    )(x, scale1, shift1, w1s, wscs)

    s2, ss2 = st2[..., 0].sum(0), st2[..., 1].sum(0)
    mu2 = s2 / cnt
    var2 = jnp.maximum(ss2 / cnt - mu2 * mu2, 0.0)
    inv2 = jax.lax.rsqrt(var2 + EPS)
    scale2 = (g2 * inv2).reshape(Cout, 1)
    shift2 = (b2 - mu2 * g2 * inv2).reshape(Cout, 1)

    # ---- pass 3: relu(bn2) -> conv2 + add shortcut -------------------------
    flops2 = 2 * N * L * Cout * 3 * Cout
    bytes2 = 4 * N * L * 3 * Cout
    out = pl.pallas_call(
        conv2_kernel,
        out_shape=jax.ShapeDtypeStruct((N, Cout, L), jnp.float32),
        grid=(N,),
        in_specs=[
            pl.BlockSpec((pl.Squeezed(), Cout, L), lambda i: (i, 0, 0)),  # y1
            pl.BlockSpec((pl.Squeezed(), Cout, L), lambda i: (i, 0, 0)),  # shortcut
            pl.BlockSpec((Cout, 1), lambda i: (0, 0)),                    # scale2
            pl.BlockSpec((Cout, 1), lambda i: (0, 0)),                    # shift2
            pl.BlockSpec((Cout, 3 * Cout), lambda i: (0, 0)),             # w2 (bf16)
        ],
        out_specs=pl.BlockSpec((pl.Squeezed(), Cout, L), lambda i: (i, 0, 0)),
        compiler_params=par,
        cost_estimate=pl.CostEstimate(flops=flops2, transcendentals=0,
                                      bytes_accessed=bytes2),
    )(y1, sc, scale2, shift2, w2s)

    return out


# ---------------------------------------------------------------------------
# Pure-JAX reference (identical semantics) for verification
# ---------------------------------------------------------------------------
def resblock_reference(x, params):
    g1, b1, g2, b2 = params["g1"], params["b1"], params["g2"], params["b2"]
    w1, w2, wsc = params["w1"], params["w2"], params["wsc"]

    def bn(z, g, b):
        mu = z.mean(axis=(0, 2), keepdims=True)
        var = ((z - mu) ** 2).mean(axis=(0, 2), keepdims=True)
        return (g[None, :, None] * (z - mu) / jnp.sqrt(var + EPS)
                + b[None, :, None])

    dn = jax.lax.conv_dimension_numbers(x.shape, w1.shape, ("NCH", "OIH", "NCH"))
    h = jax.nn.relu(bn(x, g1, b1))
    sc = jax.lax.conv_general_dilated(h, wsc, (1,), [(0, 0)], dimension_numbers=dn)
    y1 = jax.lax.conv_general_dilated(h, w1, (1,), [(1, 1)], dimension_numbers=dn)
    h2 = jax.nn.relu(bn(y1, g2, b2))
    y2 = jax.lax.conv_general_dilated(h2, w2, (1,), [(1, 1)], dimension_numbers=dn)
    return y2 + sc


if __name__ == "__main__":
    N, Cin, Cout, L = 2, 4, 8, 16   # stride=1; Cin != Cout -> shortcut conv present
    key = jax.random.PRNGKey(0)
    ks = jax.random.split(key, 8)

    x = jax.random.normal(ks[0], (N, Cin, L), jnp.float32)
    params = {
        "w1":  jax.random.normal(ks[1], (Cout, Cin, 3), jnp.float32) * (1.0 / (Cin * 3) ** 0.5),
        "w2":  jax.random.normal(ks[2], (Cout, Cout, 3), jnp.float32) * (1.0 / (Cout * 3) ** 0.5),
        "wsc": jax.random.normal(ks[3], (Cout, Cin, 1), jnp.float32) * (1.0 / Cin ** 0.5),
        "g1":  1.0 + 0.1 * jax.random.normal(ks[4], (Cin,), jnp.float32),
        "b1":  0.1 * jax.random.normal(ks[5], (Cin,), jnp.float32),
        "g2":  1.0 + 0.1 * jax.random.normal(ks[6], (Cout,), jnp.float32),
        "b2":  0.1 * jax.random.normal(ks[7], (Cout,), jnp.float32),
    }

    out = jax.block_until_ready(resblock_forward(x, params))
    ref = jax.block_until_ready(resblock_reference(x, params))

    assert out.shape == (N, Cout, L), out.shape
    # bf16 MXU inputs (f32 accumulate, f32 BN stats) -> ~1e-2-scale abs error
    # vs the all-f32 reference is expected.
    max_err = float(jnp.max(jnp.abs(out - ref)))
    assert max_err < 5e-2, f"mismatch vs reference, max abs err {max_err}"
    print("KERNEL_OK")
</pallas_src>

<mosaic_0001>
module attributes {stable_mosaic.version = 11 : i64} {
  func.func @stats_kernel(%arg0: i32, %arg1: memref<1x4x16xf32, #tpu.memory_space<vmem>>, %arg2: memref<1x4x2xf32, #tpu.memory_space<vmem>>) attributes {dimension_semantics = [#tpu.dimension_semantics<parallel>], iteration_bounds = array<i64: 2>, scalar_prefetch = 0 : i64, scratch_operands = 0 : i64, tpu.core_type = #tpu.core_type<tc>, window_params = [{transform_indices = @transform_0, window_bounds = array<i64: 1, 4, 16>}, {transform_indices = @transform_1, window_bounds = array<i64: 1, 4, 2>}]} {
    %c0 = arith.constant 0 : index
    %c0_0 = arith.constant 0 : index
    %c0_1 = arith.constant 0 : index
    %0 = vector.load %arg1[%c0, %c0_0, %c0_1] : memref<1x4x16xf32, #tpu.memory_space<vmem>>, vector<1x4x16xf32>
    %1 = vector.shape_cast %0 : vector<1x4x16xf32> to vector<4x16xf32>
    %cst = arith.constant dense<0.000000e+00> : vector<4xf32>
    %2 = vector.multi_reduction <add>, %1, %cst [1] : vector<4x16xf32> to vector<4xf32>
    %3 = vector.shape_cast %2 : vector<4xf32> to vector<4x1xf32>
    %4 = arith.mulf %1, %1 : vector<4x16xf32>
    %cst_2 = arith.constant dense<0.000000e+00> : vector<4xf32>
    %5 = vector.multi_reduction <add>, %4, %cst_2 [1] : vector<4x16xf32> to vector<4xf32>
    %6 = vector.shape_cast %5 : vector<4xf32> to vector<4x1xf32>
    %7 = tpu.concatenate %3, %6 in 1 : vector<4x1xf32>, vector<4x1xf32> -> vector<4x2xf32>
    %c0_3 = arith.constant 0 : index
    %c0_4 = arith.constant 0 : index
    %c0_5 = arith.constant 0 : index
    %8 = vector.load %arg2[%c0_3, %c0_4, %c0_5] : memref<1x4x2xf32, #tpu.memory_space<vmem>>, vector<1x4x2xf32>
    %9 = vector.shape_cast %8 : vector<1x4x2xf32> to vector<4x2xf32>
    %10 = vector.shape_cast %7 : vector<4x2xf32> to vector<1x4x2xf32>
    tpu.vector_store %arg2[%c0_3, %c0_4, %c0_5], %10 {strides = array<i32>} : memref<1x4x2xf32, #tpu.memory_space<vmem>>, vector<1x4x2xf32>,
    return
  }
  func.func @transform_0(%arg0: i32) -> (i32, i32, i32) {
    %c0_i32 = arith.constant 0 : i32
    %c0_i32_0 = arith.constant 0 : i32
    %c0_i32_1 = arith.constant 0 : i32
    return %arg0, %c0_i32, %c0_i32_0 : i32, i32, i32
  }
  func.func @transform_1(%arg0: i32) -> (i32, i32, i32) {
    %c0_i32 = arith.constant 0 : i32
    %c0_i32_0 = arith.constant 0 : i32
    %c0_i32_1 = arith.constant 0 : i32
    return %arg0, %c0_i32, %c0_i32_0 : i32, i32, i32
  }
}

</mosaic_0001>

<bundles_post_ra>
// kernel: tpu_custom_call.1
= control target key start
LH: loop header
LB: loop body
LE: loop exit
PB: predicated region body
PF: predicated region fallthrough
CT: control target
= control target key end

     0   :  { %6 = vsyncpa [#allocation3], 0  ;;  %s443_s0 = inlined_call_operand.hbm [shape: f32[2,4,16], index: 0, kind: input, shape index: {}]   ;;  %s444_s1 = inlined_call_operand.vmem [shape: f32[2,4,2], index: 1, kind: output, shape index: {}]  }
   0x1   :  { %8 = vsyncpa [#allocation3 + $0x1], 0  ;;  %s336_s6 = smov 0   ;;  %s338_s7 = smov 0  }
   0x2   :  { %s340_s8 = smov 0   ;;  %s342_s9 = smov 0  }
   0x3 LB: > { %s355_s10 = sadd.s32 4294967295, %s323_s9   ;;  %s358_s11 = sadd.s32 1, %s323_s9   ;;  %s323_s9 = sphi %s342_s9, %s452_s9   ;;  %s319_s8 = sphi %s340_s8, %s451_s8   ;;  %s315_s7 = sphi %s338_s7, %s450_s7   ;;  %s311_s6 = sphi %s336_s6, %s449_s6  }
   0x4   : > { %s18_s12 = ssub.s32 %s323_s9, %s358_s11  ;;  %s21_s13 = sadd.s32 1, %s319_s8 }
   0x5   : > { %p19_p0 = scmp.eq.s32.totalorder %s18_s12, 0  ;;  %p28_p1 = scmp.ne.s32.totalorder %s319_s8, %s315_s7 }
   0x6   : > { %p29_p2 = scmp.eq.s32.totalorder %s323_s9, 0  ;;  %p34_p3 = scmp.ne.s32.totalorder %s315_s7, %s311_s6 }
   0x7   : > { %s368_s14 = scalar_select %p19_p0, %s319_s8, %s21_s13  }
   0x8   : > { %p30_p4 = por %p29_p2, %p28_p1  ;;  %p35_p5 = scmp.eq.s32.totalorder %s355_s10, 0 }
   0x9   : > { %p226_p6 = scmp.lt.s32.totalorder %s323_s9, 2  ;;  %s84_s16 = sand.u32 1, %s319_s8  }
   0xa   : > { %p372_p7 = por %p35_p5, %p34_p3  ;;  %s213_s17 = sshll.u32 %s84_s16, 2 }
   0xb   : > { %s214_s18 = sshll.u32 %s323_s9, 6  ;;  %s88_s22 = scalar_lea.vmem [#allocation2], %s213_s17 }
   0xc   : > { %s381_s21 = scalar_lea.hbm %s443_s0, %s214_s18  ;;  %s95_s23 = sshll.u32 %s88_s22, 4  ;;  %s383_s23 = int_to_ptr.vmem [resolvable:$true] %s95_s23 }
   0xd   : > { %p385_p8 = pnand %p226_p6, %p30_p4  ;;  %s85_s25 = scalar_lea.sflag [#allocation3], %s84_s16 }
   0xe   : > { %s259_s26 = scalar_lea.hbm %s381_s21, 64  ;;  %s264_s29 = scalar_lea.hbm %s443_s0, 128 }
   0xf   : > { %p260_p11 = scmp.ne.s32.totalorder %s381_s21, %s259_s26  ;;  %p261_p12 = pneg %p385_p8 }
  0x10   : > { %p265_p1 = scmp.lt.u32.totalorder %s381_s21, %s443_s0  ;;  %p266_p2 = scmp.lt.u32.totalorder %s264_s29, %s259_s26 }
  0x11   : > { %p262_p13 = pnand %p261_p12, %p260_p11  ;;  %p268_p4 = scmp.lt.u32.totalorder %s259_s26, %s381_s21 }
  0x12   : > { %p267_p3 = por %p266_p2, %p265_p1 }
  0x13   : > { %p263_p0 = pneg %p262_p13 }
  0x14   : > { %p269_p5 = por %p268_p4, %p267_p3 }
  0x16   : > { %p270_p6 = pnand %p269_p5, %p263_p0 }
  0x18   : > { %273 = shalt.err (!%p270_p6)
}
  0x19   : > { %s274_s3 = scalar_lea.vmem %s383_s23, 64  ;;  %s325_s4 = smov [#allocation2]  }
  0x1a   : > { %p275_p11 = scmp.ne.s32.totalorder %s383_s23, %s274_s3  ;;  %s279_s5 = sshll.u32 %s325_s4, 4  ;;  %s280_s5 = int_to_ptr.vmem [resolvable:$false] %s279_s5 }
  0x1b   : > { %s281_s6 = scalar_lea.vmem %s280_s5, 128  ;;  %p282_p10 = scmp.lt.s32.totalorder %s383_s23, %s280_s5 }
  0x1c   : > { %p277_p13 = pnand %p275_p11, %p261_p12  ;;  %p283_p1 = scmp.lt.s32.totalorder %s281_s6, %s274_s3 }
  0x1e   : > { %p278_p9 = pneg %p277_p13  ;;  %p284_p2 = por %p283_p1, %p282_p10 }
  0x20   : > { %p285_p3 = pnand %p284_p2, %p278_p9 }
  0x22   : > { %288 = shalt.err (!%p285_p3)
}
  0x23   : > { %225 = dma.hbm_to_vmem [thread:$0]  (!%p385_p8), %s381_s21, 64, %s383_s23, %s85_s25  }
  0x24   : > { %p447_p0 = scmp.lt.s32.totalorder %s323_s9, 3  ;;  %p448_p4 = scmp.ge.s32.totalorder %s323_s9, 1 }
  0x26   : > { %p101_p12 = pnand %p448_p4, %p447_p0 }
  0x27   : > { %s106_s12 = sand.u32 (!%p101_p12), 1, %s315_s7  }
  0x28   : > { %104 = sbr.rel (%p101_p12) target bundleno = 198 (0xc6), region = 24  ;;  %s216_s13 = sshll.u32 (!%p101_p12), %s106_s12, 2 }
  0x29   : > { %s107_s16 = scalar_lea.sflag (!%p101_p12), [#allocation3], %s106_s12  ;;  %s110_s17 = scalar_lea.vmem (!%p101_p12), [#allocation2], %s216_s13 }
  0x2f   : > { %306 = dma.done.wait (%p372_p7), %s107_s16, 64  }
  0x30   : > { %308 = vsyncadd (%p372_p7), %s107_s16, 4294967232  ;;  %vm133_vm0 = vcmask 125952   ;;  %v132_v0 = vld [vmem:[%s110_s17] sm:$0xf]  ;;  %p128_p8 = scmp.lt.s32.totalorder %s355_s10, 1  ;;  %vm141_vm1 = vcmask 7168  }
  0x31   : > { %v134_v1 = vsel %vm133_vm0, %v132_v0, 0.0  ;;  %v137_v2 = vmul.f32 %v132_v0, %v132_v0  ;;  %vm143_vm2 = vcmask 11264  }
  0x32   : > { %135 = vadd.xlane.f32.xlu0 %v134_v1  ;;  %s454_s10 = smov (!%p128_p8, %s355_s10), 1 }
  0x33   : > { %v138_v3 = vsel %vm133_vm0, %v137_v2, 0.0  ;;  %s217_s9 = sshll.u32 %s454_s10, 2 }
  0x34   : > { %s131_s20 = scalar_lea.vmem %s444_s1, %s217_s9 }
  0x36   : > { %139 = vadd.xlane.f32.xlu0 %v138_v3 }
  0xbf   : > { %v136_v4 = vpop.xlane.xlu0 %135 }
  0xc3   : > { %v140_v5 = vpop.xlane.xlu0 %139 }
  0xc4   : > { %v142_v6 = vsel %vm141_vm1, %v136_v4, %v140_v5 }
  0xc5   : > { %144 = vst.msk [vmem:[%s131_s20] sm:$0xf] %vm143_vm2, %v142_v6 }
  0xc6 PF: > { %p11_p7 = scmp.ge.s32.totalorder %s358_s11, 4   ;;  %s449_s6 = smov %s315_s7 }
  0xc7   : > { %s450_s7 = smov %s319_s8  ;;  %s451_s8 = smov %s368_s14 }
  0xc8   : > { %s452_s9 = smov %s358_s11  ;;  %13 = sbr.rel (!%p11_p7) target bundleno = 3 (0x3), region = 64 }
  0xcf   :  { %164 = vsyncpa [#allocation3], 1 }
  0xd0   :  { %166 = vsyncpa [#allocation3 + $0x1], 1 }

</bundles_post_ra>
